<compile_context>
chip_gen: v7x
topology: tpu7x:2x2x1
jax: 0.10.0
libtpu: 0.0.40
codegen_flags: <defaults>
</compile_context>

<pallas_src>
import functools
import math

import jax
import jax.numpy as jnp
from jax import lax
from jax.experimental import pallas as pl
from jax.experimental.pallas import tpu as pltpu

T = 4.0                        # temperature (module hardcodes self.T = 4)
_LOG_CLAMP = math.log(1e-12)   # clamp(min=1e-12).log() == max(log_p, log(1e-12))


def _kl_kernel(student_ref, teacher_ref, out_ref, *, n_rows, tile_n,
               blocks_per_shard, needs_mask):
    j = pl.program_id(1)

    @pl.when(j == 0)
    def _init():
        out_ref[...] = jnp.zeros_like(out_ref)

    inv_t = jnp.float32(1.0 / T)
    s = student_ref[...].astype(jnp.float32) * inv_t
    t = teacher_ref[...].astype(jnp.float32) * inv_t

    # log-softmax over classes (lanes) via log-sum-exp: only 2 exps per element on the
    # single-slot EUP; logs + reciprocal are per-row; no N*C divide, no prob clamp.
    # TODO(synk): on v7x with bf16 inputs the 2 f32 exps/element may become the binding
    # EUP slot at 3.2 TB/s HBM; if profiling confirms, compute the exps in bf16 with f32
    # row sums (measured precision/perf tradeoff).  The 2-shard split already halves
    # per-core EUP demand.
    s_shift = s - jnp.max(s, axis=1, keepdims=True)
    t_shift = t - jnp.max(t, axis=1, keepdims=True)
    s_exp = jnp.exp(s_shift)
    t_exp = jnp.exp(t_shift)
    s_sum = jnp.sum(s_exp, axis=1, keepdims=True)   # (TILE_N, 1)
    t_sum = jnp.sum(t_exp, axis=1, keepdims=True)   # (TILE_N, 1)

    # Preserve the module's clamp(min=1e-12).log() semantics exactly (VPU max, no EUP).
    log_s = jnp.maximum(s_shift - jnp.log(s_sum), jnp.float32(_LOG_CLAMP))
    log_t = jnp.maximum(t_shift - jnp.log(t_sum), jnp.float32(_LOG_CLAMP))

    # Teacher probability: one per-row reciprocal + broadcast multiply (no N*C divide).
    t_prob = t_exp * (1.0 / t_sum)

    per_row = jnp.sum((log_t - log_s) * t_prob, axis=1, keepdims=True)  # (TILE_N, 1)

    if needs_mask:
        # Rows past N (edge padding / duplicate clamped block) only ever pollute their
        # own row (all reductions above are per-row), and the select discards them here.
        blk = pl.program_id(0) * blocks_per_shard + j
        row = blk * tile_n + lax.broadcasted_iota(jnp.int32, (tile_n, 1), 0)
        per_row = jnp.where(row < n_rows, per_row, 0.0)

    # Every element of this shard's (1, 8, 128) block carries the same partial sum;
    # the wrapper reads element [s, 0, 0] per shard.  Lane-dense, unmasked stores.
    out_ref[...] += jnp.sum(per_row)


def _choose_tile_n(c, sub):
    # Size TILE_N so one (TILE_N, C) f32 temporary is ~1 MiB.  With 2 inputs x 2
    # pipeline buffers plus ~6-9 f32 temporaries this stays comfortably under the
    # 32 MiB scoped-VMEM default on every generation (incl. v7x's 64 MiB physical).
    # Mem-bound throughput plateaus well before larger tiles would help.
    budget = 1 << 20
    tn = budget // (4 * c)
    return max(sub, (tn // sub) * sub)


def kl_divergence(student: jax.Array, teacher: jax.Array, *, tile_n=None) -> jax.Array:
    assert student.shape == teacher.shape and student.ndim == 2
    n, c = student.shape
    itemsize = student.dtype.itemsize
    # Native sublane multiple: f32 -> 8, bf16 -> 16, int8/fp8 -> 32.
    sub = max(8, 32 // itemsize)

    if tile_n is None:
        tile_n = _choose_tile_n(c, sub)
    if tile_n >= n:
        tile_n = n                                   # full-rows block: always layout-legal
    else:
        tile_n = max(sub, (tile_n // sub) * sub)     # dtype-native sublane multiple

    num_blocks = pl.cdiv(n, tile_n)
    # Two shards on a leading "parallel" axis: v7x (2 TCs/chip) streams half the rows on
    # each core; on v5e/v6e (1 TC) it is just a harmless outer loop of length 2.
    num_shards = 2 if num_blocks >= 2 else 1
    blocks_per_shard = pl.cdiv(num_blocks, num_shards)
    needs_mask = (num_shards * blocks_per_shard * tile_n) != n
    last_block = num_blocks - 1

    kernel = functools.partial(
        _kl_kernel, n_rows=n, tile_n=tile_n,
        blocks_per_shard=blocks_per_shard, needs_mask=needs_mask)

    def in_map(s_idx, j):
        # Clamp so a duplicate trailing block (odd num_blocks) never issues an OOB DMA;
        # its rows are >= n and are zeroed by the per-row mask in the kernel.
        return (jnp.minimum(s_idx * blocks_per_shard + j, last_block), 0)

    cost = pl.CostEstimate(
        flops=10 * n * c,
        transcendentals=2 * n * c,
        bytes_accessed=2 * n * c * itemsize + num_shards * 8 * 128 * 4,
    )

    out = pl.pallas_call(
        kernel,
        out_shape=jax.ShapeDtypeStruct((num_shards, 8, 128), jnp.float32),
        grid_spec=pltpu.PrefetchScalarGridSpec(
            num_scalar_prefetch=0,
            grid=(num_shards, blocks_per_shard),
            in_specs=[
                pl.BlockSpec((tile_n, c), in_map),
                pl.BlockSpec((tile_n, c), in_map),
            ],
            # Per-shard accumulator block: constant along the inner "arbitrary" axis
            # (resident), distinct along the "parallel" axis (no cross-core conflict).
            out_specs=pl.BlockSpec((1, 8, 128), lambda s_idx, j: (s_idx, 0, 0)),
        ),
        compiler_params=pltpu.CompilerParams(
            dimension_semantics=("parallel", "arbitrary"),
        ),
        cost_estimate=cost,
    )(student, teacher)

    partials = out[:, 0, 0]                      # one partial KL sum per shard
    return jnp.sum(partials) * jnp.float32(1.0 / n)


def _reference(student, teacher):
    s = jax.nn.softmax(student.astype(jnp.float32) / T, axis=1)
    t = jax.nn.softmax(teacher.astype(jnp.float32) / T, axis=1)
    log_s = jnp.log(jnp.maximum(s, 1e-12))
    log_t = jnp.log(jnp.maximum(t, 1e-12))
    return jnp.mean(jnp.sum((log_t - log_s) * t, axis=1))


if __name__ == "__main__":
    key = jax.random.PRNGKey(0)

    # Test 1: small (N, C) float32 logits, single block / single shard.
    k1, k2, k3, k4 = jax.random.split(key, 4)
    n1, c1 = 8, 32
    student1 = jax.random.normal(k1, (n1, c1), dtype=jnp.float32)
    teacher1 = jax.random.normal(k2, (n1, c1), dtype=jnp.float32)
    loss1 = kl_divergence(student1, teacher1)
    jax.block_until_ready(loss1)
    ref1 = _reference(student1, teacher1)
    assert jnp.allclose(loss1, ref1, atol=1e-5, rtol=1e-5), (loss1, ref1)

    # Test 2: bf16 logits, tiled over N with 2 shards, a clamped duplicate block and
    # masked remainder rows (n=40, tile=16 -> 3 row blocks over a (2,2) grid).
    n2, c2 = 40, 128
    student2 = jax.random.normal(k3, (n2, c2), dtype=jnp.float32).astype(jnp.bfloat16)
    teacher2 = jax.random.normal(k4, (n2, c2), dtype=jnp.float32).astype(jnp.bfloat16)
    loss2 = kl_divergence(student2, teacher2, tile_n=16)
    jax.block_until_ready(loss2)
    ref2 = _reference(student2, teacher2)
    assert jnp.allclose(loss2, ref2, atol=1e-5, rtol=1e-4), (loss2, ref2)

    print("KERNEL_OK")
</pallas_src>

<mosaic_0001>
module attributes {stable_mosaic.version = 11 : i64} {
  func.func @_kl_kernel(%arg0: i32, %arg1: i32, %arg2: memref<8x32xf32, #tpu.memory_space<vmem>>, %arg3: memref<8x32xf32, #tpu.memory_space<vmem>>, %arg4: memref<1x8x128xf32, #tpu.memory_space<vmem>>) attributes {dimension_semantics = [#tpu.dimension_semantics<parallel>, #tpu.dimension_semantics<arbitrary>], iteration_bounds = array<i64: 1, 1>, scalar_prefetch = 0 : i64, scratch_operands = 0 : i64, tpu.core_type = #tpu.core_type<tc>, window_params = [{transform_indices = @transform_0, window_bounds = array<i64: 8, 32>}, {transform_indices = @transform_1, window_bounds = array<i64: 8, 32>}, {transform_indices = @transform_2, window_bounds = array<i64: 1, 8, 128>}]} {
    %c0_i32 = arith.constant 0 : i32
    %0 = arith.cmpi eq, %arg1, %c0_i32 : i32
    %1 = arith.extui %0 : i1 to i32
    %c0_i32_0 = arith.constant 0 : i32
    %2 = arith.cmpi ne, %1, %c0_i32_0 : i32
    scf.if %2 {
      %cst_20 = arith.constant 0.000000e+00 : f32
      %49 = vector.broadcast %cst_20 : f32 to vector<1x8x128xf32>
      %c0_21 = arith.constant 0 : index
      %c0_22 = arith.constant 0 : index
      %c0_23 = arith.constant 0 : index
      %50 = vector.load %arg4[%c0_21, %c0_22, %c0_23] : memref<1x8x128xf32, #tpu.memory_space<vmem>>, vector<1x8x128xf32>
      tpu.vector_store %arg4[%c0_21, %c0_22, %c0_23], %49 {strides = array<i32>} : memref<1x8x128xf32, #tpu.memory_space<vmem>>, vector<1x8x128xf32>,
    } else {
    }
    %c0 = arith.constant 0 : index
    %c0_1 = arith.constant 0 : index
    %3 = vector.load %arg2[%c0, %c0_1] : memref<8x32xf32, #tpu.memory_space<vmem>>, vector<8x32xf32>
    %cst = arith.constant 2.500000e-01 : f32
    %4 = vector.broadcast %cst : f32 to vector<8x32xf32>
    %5 = arith.mulf %3, %4 : vector<8x32xf32>
    %c0_2 = arith.constant 0 : index
    %c0_3 = arith.constant 0 : index
    %6 = vector.load %arg3[%c0_2, %c0_3] : memref<8x32xf32, #tpu.memory_space<vmem>>, vector<8x32xf32>
    %cst_4 = arith.constant 2.500000e-01 : f32
    %7 = vector.broadcast %cst_4 : f32 to vector<8x32xf32>
    %8 = arith.mulf %6, %7 : vector<8x32xf32>
    %cst_5 = arith.constant dense<0xFF800000> : vector<8xf32>
    %9 = vector.multi_reduction <maximumf>, %5, %cst_5 [1] : vector<8x32xf32> to vector<8xf32>
    %10 = vector.shape_cast %9 : vector<8xf32> to vector<8x1xf32>
    %11 = vector.broadcast %10 : vector<8x1xf32> to vector<8x32xf32>
    %12 = arith.subf %5, %11 : vector<8x32xf32>
    %cst_6 = arith.constant dense<0xFF800000> : vector<8xf32>
    %13 = vector.multi_reduction <maximumf>, %8, %cst_6 [1] : vector<8x32xf32> to vector<8xf32>
    %14 = vector.shape_cast %13 : vector<8xf32> to vector<8x1xf32>
    %15 = vector.broadcast %14 : vector<8x1xf32> to vector<8x32xf32>
    %16 = arith.subf %8, %15 : vector<8x32xf32>
    %17 = math.exp %12 : vector<8x32xf32>
    %18 = math.exp %16 : vector<8x32xf32>
    %cst_7 = arith.constant dense<0.000000e+00> : vector<8xf32>
    %19 = vector.multi_reduction <add>, %17, %cst_7 [1] : vector<8x32xf32> to vector<8xf32>
    %20 = vector.shape_cast %19 : vector<8xf32> to vector<8x1xf32>
    %cst_8 = arith.constant dense<0.000000e+00> : vector<8xf32>
    %21 = vector.multi_reduction <add>, %18, %cst_8 [1] : vector<8x32xf32> to vector<8xf32>
    %22 = vector.shape_cast %21 : vector<8xf32> to vector<8x1xf32>
    %23 = math.log %20 : vector<8x1xf32>
    %24 = vector.broadcast %23 : vector<8x1xf32> to vector<8x32xf32>
    %25 = arith.subf %12, %24 : vector<8x32xf32>
    %cst_9 = arith.constant -27.6310215 : f32
    %26 = vector.broadcast %cst_9 : f32 to vector<8x32xf32>
    %27 = arith.maximumf %25, %26 : vector<8x32xf32>
    %28 = math.log %22 : vector<8x1xf32>
    %29 = vector.broadcast %28 : vector<8x1xf32> to vector<8x32xf32>
    %30 = arith.subf %16, %29 : vector<8x32xf32>
    %cst_10 = arith.constant -27.6310215 : f32
    %31 = vector.broadcast %cst_10 : f32 to vector<8x32xf32>
    %32 = arith.maximumf %30, %31 : vector<8x32xf32>
    %cst_11 = arith.constant 1.000000e+00 : f32
    %33 = vector.broadcast %cst_11 : f32 to vector<8x1xf32>
    %34 = arith.divf %33, %22 : vector<8x1xf32>
    %35 = vector.broadcast %34 : vector<8x1xf32> to vector<8x32xf32>
    %36 = arith.mulf %18, %35 : vector<8x32xf32>
    %37 = arith.subf %32, %27 : vector<8x32xf32>
    %38 = arith.mulf %37, %36 : vector<8x32xf32>
    %cst_12 = arith.constant dense<0.000000e+00> : vector<8xf32>
    %39 = vector.multi_reduction <add>, %38, %cst_12 [1] : vector<8x32xf32> to vector<8xf32>
    %40 = vector.shape_cast %39 : vector<8xf32> to vector<8x1xf32>
    %c0_13 = arith.constant 0 : index
    %c0_14 = arith.constant 0 : index
    %c0_15 = arith.constant 0 : index
    %41 = vector.load %arg4[%c0_13, %c0_14, %c0_15] : memref<1x8x128xf32, #tpu.memory_space<vmem>>, vector<1x8x128xf32>
    %42 = vector.shape_cast %40 : vector<8x1xf32> to vector<1x8x1xf32>
    %cst_16 = arith.constant dense<0.000000e+00> : vector<1xf32>
    %43 = vector.multi_reduction <add>, %42, %cst_16 [1, 2] : vector<1x8x1xf32> to vector<1xf32>
    %44 = vector.shape_cast %43 : vector<1xf32> to vector<1x1x1xf32>
    %45 = vector.extract %44[0, 0, 0] : f32 from vector<1x1x1xf32>
    %46 = vector.broadcast %45 : f32 to vector<1x8x128xf32>
    %47 = arith.addf %41, %46 : vector<1x8x128xf32>
    %c0_17 = arith.constant 0 : index
    %c0_18 = arith.constant 0 : index
    %c0_19 = arith.constant 0 : index
    %48 = vector.load %arg4[%c0_17, %c0_18, %c0_19] : memref<1x8x128xf32, #tpu.memory_space<vmem>>, vector<1x8x128xf32>
    tpu.vector_store %arg4[%c0_17, %c0_18, %c0_19], %47 {strides = array<i32>} : memref<1x8x128xf32, #tpu.memory_space<vmem>>, vector<1x8x128xf32>,
    return
  }
  func.func @transform_0(%arg0: i32, %arg1: i32) -> (i32, i32) {
    %c1_i32 = arith.constant 1 : i32
    %0 = arith.muli %arg0, %c1_i32 : i32
    %1 = arith.addi %0, %arg1 : i32
    %c0_i32 = arith.constant 0 : i32
    %2 = arith.minsi %1, %c0_i32 : i32
    %c0_i32_0 = arith.constant 0 : i32
    %c0_i32_1 = arith.constant 0 : i32
    return %2, %c0_i32_0 : i32, i32
  }
  func.func @transform_1(%arg0: i32, %arg1: i32) -> (i32, i32) {
    %c1_i32 = arith.constant 1 : i32
    %0 = arith.muli %arg0, %c1_i32 : i32
    %1 = arith.addi %0, %arg1 : i32
    %c0_i32 = arith.constant 0 : i32
    %2 = arith.minsi %1, %c0_i32 : i32
    %c0_i32_0 = arith.constant 0 : i32
    %c0_i32_1 = arith.constant 0 : i32
    return %2, %c0_i32_0 : i32, i32
  }
  func.func @transform_2(%arg0: i32, %arg1: i32) -> (i32, i32, i32) {
    %c0_i32 = arith.constant 0 : i32
    %c0_i32_0 = arith.constant 0 : i32
    %c0_i32_1 = arith.constant 0 : i32
    return %arg0, %c0_i32, %c0_i32_0 : i32, i32, i32
  }
}

</mosaic_0001>

<bundles_post_ra>
// kernel: tpu_custom_call.1
= control target key start
LH: loop header
LB: loop body
LE: loop exit
PB: predicated region body
PF: predicated region fallthrough
CT: control target
= control target key end

     0   :  { %7 = vsyncpa [#allocation3], 0  ;;  %s278_s0 = inlined_call_operand.hbm [shape: f32[8,32], index: 0, kind: input, shape index: {}]   ;;  %s279_s1 = inlined_call_operand.hbm [shape: f32[8,32], index: 1, kind: input, shape index: {}]   ;;  %s280_s2 = inlined_call_operand.hbm [shape: f32[1,8,128], index: 2, kind: output, shape index: {}]  }
   0x1   :  { %8 = vsyncpa [#allocation6], 0 }
   0x2   :  { %9 = vsyncpa [#allocation4], 0  ;;  %s219_s9 = smov [#allocation2]   ;;  %s220_s11 = smov [#allocation5]  }
   0x3   :  { %s21_s10 = sshll.u32 %s219_s9, 4  ;;  %s36_s12 = sshll.u32 %s220_s11, 4  ;;  %s22_s10 = int_to_ptr.vmem [resolvable:$true] %s21_s10  ;;  %s37_s12 = int_to_ptr.vmem [resolvable:$true] %s36_s12 }
   0x4   :  { %s147_s15 = scalar_lea.hbm %s278_s0, 128 }
   0x5   :  { %p148_p0 = scmp.ne.s32.totalorder %s278_s0, %s147_s15  ;;  %p151_p1 = scmp.lt.u32.totalorder %s147_s15, %s278_s0 }
   0x7   :  { %p153_p2 = pnand %p151_p1, %p148_p0 }
   0x9   :  { %156 = shalt.err (!%p153_p2)
}
   0xa   :  { %s157_s20 = scalar_lea.vmem %s22_s10, 128  ;;  %p162_p4 = scmp.lt.s32.totalorder %s22_s10, %s22_s10 }
   0xb   :  { %p158_p3 = scmp.ne.s32.totalorder %s22_s10, %s157_s20  ;;  %p163_p5 = scmp.lt.s32.totalorder %s157_s20, %s157_s20 }
   0xd   :  { %p164_p6 = por %p163_p5, %p162_p4 }
   0xf   :  { %p165_p7 = pnand %p164_p6, %p158_p3 }
  0x11   :  { %168 = shalt.err (!%p165_p7)
}
  0x12   :  { %24 = dma.hbm_to_vmem [thread:$0]  %s278_s0, 128, %s22_s10, [#allocation3]  }
  0x13   :  { %s169_s25 = scalar_lea.hbm %s279_s1, 128 }
  0x14   :  { %p170_p8 = scmp.ne.s32.totalorder %s279_s1, %s169_s25  ;;  %p173_p9 = scmp.lt.u32.totalorder %s169_s25, %s279_s1 }
  0x16   :  { %p175_p10 = pnand %p173_p9, %p170_p8 }
  0x18   :  { %178 = shalt.err (!%p175_p10)
}
  0x19   :  { %s179_s30 = scalar_lea.vmem %s37_s12, 128  ;;  %p184_p12 = scmp.lt.s32.totalorder %s37_s12, %s37_s12 }
  0x1a   :  { %p180_p11 = scmp.ne.s32.totalorder %s37_s12, %s179_s30  ;;  %p185_p13 = scmp.lt.s32.totalorder %s179_s30, %s179_s30 }
  0x1c   :  { %p186_p0 = por %p185_p13, %p184_p12 }
  0x1e   :  { %p187_p1 = pnand %p186_p0, %p180_p11 }
  0x20   :  { %190 = shalt.err (!%p187_p1)
}
  0x21   :  { %39 = dma.hbm_to_vmem [thread:$0]  %s279_s1, 128, %s37_s12, [#allocation6]  }
  0x22   :  { %213 = dma.done.wait [#allocation3], 128  }
  0x23   :  { %214 = vsyncadd [#allocation3], 4294967168 }
  0x24   :  { %215 = dma.done.wait [#allocation6], 128  }
  0x25   :  { %216 = vsyncadd [#allocation6], 4294967168  ;;  %v57_v0 = vld [vmem:[#allocation2] sm:$0xff]  ;;  %vm61_vm0 = vcmask 261120   ;;  %v59_v1 = vld [vmem:[#allocation5] sm:$0xff]  ;;  %vm97_vm1 = vcmask 7168  }
  0x26   :  { %v58_v2 = vmul.f32 0.25, %v57_v0  ;;  %v60_v3 = vmul.f32 0.25, %v59_v1  ;;  %s221_s1 = smov [#allocation7]  }
  0x27   :  { %s117_s4 = sshll.u32 %s221_s1, 4  ;;  %s118_s4 = int_to_ptr.vmem [resolvable:$true] %s117_s4 }
  0x28   :  { %v62_v4 = vsel %vm61_vm0, %v58_v2, -inf  ;;  %v66_v5 = vsel %vm61_vm0, %v60_v3, -inf  ;;  %s191_s6 = scalar_lea.vmem %s118_s4, 128  ;;  %p196_p3 = scmp.lt.s32.totalorder %s118_s4, %s118_s4 }
  0x29   :  { %63 = vmax.xlane.f32.xlu0 %v62_v4  ;;  %p192_p2 = scmp.ne.s32.totalorder %s118_s4, %s191_s6  ;;  %p197_p4 = scmp.lt.s32.totalorder %s191_s6, %s191_s6 }
  0x2b   :  { %p198_p5 = por %p197_p4, %p196_p3 }
  0x2d   :  { %67 = vmax.xlane.f32.xlu0 %v66_v5  ;;  %p199_p6 = pnand %p198_p5, %p192_p2 }
  0xb6   :  { %v64_v6 = vpop.xlane.xlu0 %63 }
  0xb7   :  { %v65_v7 = vsub.f32 %v58_v2, %v64_v6 }
  0xb9   :  { %v70_v8 = vmul.f32 1.442695, %v65_v7 }
  0xba   :  { %v68_v9 = vpop.xlane.xlu0 %67 }
  0xbb   :  { %137 = vpow2.f32 %v70_v8  ;;  %v69_v10 = vsub.f32 %v60_v3, %v68_v9 }
  0xbd   :  { %v72_v11 = vmul.f32 1.442695, %v69_v10 }
  0xbf   :  { %139 = vpow2.f32 %v72_v11 }
  0xc5   :  { %v138_v12 = vpop.eup %137 }
  0xc6   :  { %v74_v13 = vsel %vm61_vm0, %v138_v12, 0.0 }
  0xc7   :  { %75 = vadd.xlane.f32.xlu1 %v74_v13 }
  0xc9   :  { %v140_v14 = vpop.eup %139 }
  0xca   :  { %v77_v15 = vsel %vm61_vm0, %v140_v14, 0.0 }
  0xcb   :  { %78 = vadd.xlane.f32.xlu1 %v77_v15 }
 0x154   :  { %v76_v16 = vpop.xlane.xlu1 %75 }
 0x155   :  { %141 = vlog2.f32 %v76_v16 }
 0x158   :  { %v79_v17 = vpop.xlane.xlu1 %78 }
 0x159   :  { %143 = vlog2.f32 %v79_v17 }
 0x15a   :  { %145 = vrcp.f32 %v79_v17 }
 0x15f   :  { %v142_v18 = vpop.eup %141 }
 0x160   :  { %v81_v19 = vmul.f32 0.6931472, %v142_v18 }
 0x162   :  { %v82_v21 = vsub.f32 %v65_v7, %v81_v19 }
 0x163   :  { %v144_v20 = vpop.eup %143 }
 0x164   :  { %v85_v22 = vmul.f32 0.6931472, %v144_v20  ;;  %v146_v24 = vpop.eup %145  ;;  %v83_v25 = vmax.f32 %v82_v21, -27.631021 }
 0x165   :  { %v90_v27 = vmul.f32 %v146_v24, %v140_v14 }
 0x166   :  { %v86_v23 = vsub.f32 %v69_v10, %v85_v22 }
 0x168   :  { %v87_v26 = vmax.f32 %v86_v23, -27.631021 }
 0x16a   :  { %v91_v28 = vsub.f32 %v87_v26, %v83_v25 }
 0x16c   :  { %v92_v29 = vmul.f32 %v91_v28, %v90_v27 }
 0x16e   :  { %v93_v30 = vsel %vm61_vm0, %v92_v29, 0.0 }
 0x16f   :  { %94 = vadd.xlane.f32.xlu0 %v93_v30 }
 0x1fc   :  { %v95_v31 = vpop.xlane.xlu0 %94 }
 0x1fd   :  { %v98_v32 = vsel %vm97_vm1, %v95_v31, 0.0 }
 0x1fe   :  { %99 = vadd.xlane.f32.xlu1 %v98_v32 }
 0x28b   :  { %v100_v33 = vpop.xlane.xlu1 %99 }
 0x28c   :  { %v101_v34 = vrot.slane %v100_v33, 4 }
 0x28e   :  { %v102_v35 = vadd.f32 %v101_v34, %v100_v33 }
 0x290   :  { %v103_v36 = vrot.slane %v102_v35, 2 }
 0x292   :  { %v104_v37 = vadd.f32 %v103_v36, %v102_v35 }
 0x294   :  { %v105_v38 = vrot.slane %v104_v37, 1 }
 0x296   :  { %v106_v39 = vadd.f32 %v105_v38, %v104_v37 }
 0x298   :  { %131 = vpush %v106_v39 }
 0x2c9   :  { %s132_s5 = spop %131 }
 0x2ca   :  { %v108_v40 = vstv %s132_s5 }
 0x2cb   :  { %110 = vst [vmem:[#allocation7] sm:$0xff] %v108_v40 }
 0x2cc   :  { %202 = shalt.err (!%p199_p6)
}
 0x2cd   :  { %s203_s9 = scalar_lea.hbm %s280_s2, 128 }
 0x2ce   :  { %p204_p7 = scmp.ne.s32.totalorder %s280_s2, %s203_s9  ;;  %p207_p8 = scmp.lt.u32.totalorder %s203_s9, %s280_s2 }
 0x2d0   :  { %p209_p9 = pnand %p207_p8, %p204_p7 }
 0x2d2   :  { %212 = shalt.err (!%p209_p9)
}
 0x2d3   :  { %120 = dma.vmem_to_hbm [thread:$0]  %s118_s4, 128, %s280_s2, [#allocation4]  }
 0x2d4   :  { %217 = dma.done.wait [#allocation4], 128  }
 0x2d5   :  { %218 = vsyncadd [#allocation4], 4294967168 }
 0x2d6   :  { %124 = vsyncpa [#allocation3], 1 }
 0x2d7   :  { %125 = vsyncpa [#allocation6], 1 }
 0x2d8   :  { %126 = vsyncpa [#allocation4], 1 }

</bundles_post_ra>
